<compile_context>
chip_gen: v7x
topology: tpu7x:2x2x1
jax: 0.10.0
libtpu: 0.0.40
codegen_flags: <defaults>
</compile_context>

<pallas_src>
import math

import jax
import jax.numpy as jnp
from jax.experimental import pallas as pl
from jax.experimental.pallas import tpu as pltpu

_TARGET_BLOCK_BYTES = 4 * 1024 * 1024   # per-buffer block target (2-4 MiB sweet spot)
_MIN_GRID_STEPS = 8                     # keep >= ~8 steps for v7x megacore + pipeline
_DEFAULT_BYPASS_BYTES = 1 << 20         # below this, let XLA fuse the multiply


def _scale_kernel(scale_ref, x_ref, o_ref):
    # scale_ref: (1,) f32 in SMEM (scalar prefetch); x_ref/o_ref: VMEM tiles.
    # Cast the scalar to the tile dtype so low-precision tiles are not promoted.
    o_ref[...] = x_ref[...] * scale_ref[0].astype(x_ref.dtype)


def _sublane_multiple(dtype) -> int:
    """Packed-sublane multiple for a dtype: 8 for 32-bit, 16 for 16-bit, 32 for 8-bit."""
    itemsize = jnp.dtype(dtype).itemsize
    return 8 * max(1, 4 // itemsize)


def _row_tile(rows: int, width: int, itemsize: int, sub: int) -> int:
    """Row-tile size targeting ~_TARGET_BLOCK_BYTES per block, >= _MIN_GRID_STEPS steps."""
    if rows <= sub:
        return rows                       # full extent: (8,128) rule does not apply
    tr = max(sub, _TARGET_BLOCK_BYTES // (width * itemsize))
    steps_cap = rows // _MIN_GRID_STEPS
    if steps_cap >= sub:                  # only cap when blocks stay reasonably sized
        tr = min(tr, steps_cap)
    tr = max(sub, (tr // sub) * sub)      # unmasked, sublane-aligned stores
    return min(tr, rows)


def scale_forward(
    x: jax.Array,
    scale: jax.Array,
    *,
    min_pallas_bytes: int = _DEFAULT_BYPASS_BYTES,
) -> jax.Array:
    """Elementwise multiply of tensor `x` (any shape) by scalar parameter `scale`."""
    orig_shape = x.shape
    dtype = x.dtype
    n = x.size
    itemsize = jnp.dtype(dtype).itemsize
    scale_f32 = jnp.asarray(scale, dtype=jnp.float32)

    # Small-tensor bypass: a standalone pallas_call costs more than the work;
    # let XLA fuse the scalar multiply into the producer.
    if n * itemsize < min_pallas_bytes:
        return x * scale_f32.astype(dtype)

    scale_arr = scale_f32.reshape((1,))
    cost = pl.CostEstimate(flops=n, transcendentals=0, bytes_accessed=2 * n * itemsize)
    cparams = pltpu.CompilerParams(dimension_semantics=("parallel",))

    # --- Lane-dense path: free reshape to (rows, width), width | n ------------
    width = None
    for w in (512, 256, 128):
        if n % w == 0:
            width = w
            break

    if width is not None:
        rows = n // width
        sub = _sublane_multiple(dtype)
        tr = _row_tile(rows, width, itemsize, sub)
        x2d = x.reshape(rows, width)

        out2d = pl.pallas_call(
            _scale_kernel,
            out_shape=jax.ShapeDtypeStruct((rows, width), dtype),
            grid_spec=pltpu.PrefetchScalarGridSpec(
                num_scalar_prefetch=1,
                grid=(pl.cdiv(rows, tr),),
                in_specs=[pl.BlockSpec((tr, width), lambda i, s: (i, 0))],
                out_specs=pl.BlockSpec((tr, width), lambda i, s: (i, 0)),
            ),
            compiler_params=cparams,
            cost_estimate=cost,
        )(scale_arr, x2d)
        return out2d.reshape(orig_shape)

    # --- Fallback (n not divisible by 128): tile the leading dim --------------
    # Last two dims are kept full-extent so the (8,128) divisibility rule never
    # applies; the leading dim is tiled so the DMA still pipelines and a single
    # block never has to hold the whole array in VMEM.
    shape = orig_shape if x.ndim >= 2 else (1, n)
    xv = x.reshape(shape)
    ndim = len(shape)
    lead = shape[0]
    tail_bytes = math.prod(shape[1:]) * itemsize

    tn = max(1, min(lead, _TARGET_BLOCK_BYTES // max(1, tail_bytes)))
    steps_cap = lead // _MIN_GRID_STEPS
    if steps_cap >= 1:
        tn = min(tn, steps_cap)
    if ndim == 2 and tn < lead:
        # tn is the second-to-last block dim here -> must be a sublane multiple.
        sub = _sublane_multiple(dtype)
        tn = lead if lead <= sub else min(lead, max(sub, (tn // sub) * sub))
    # NOTE: if a single trailing slab (shape[1:]) were itself larger than VMEM,
    # deeper tiling / vmem_limit_bytes would be needed; not the case for FCOS maps.

    block = (tn,) + tuple(shape[1:])
    zeros = (0,) * (ndim - 1)

    out = pl.pallas_call(
        _scale_kernel,
        out_shape=jax.ShapeDtypeStruct(shape, dtype),
        grid_spec=pltpu.PrefetchScalarGridSpec(
            num_scalar_prefetch=1,
            grid=(pl.cdiv(lead, tn),),
            in_specs=[pl.BlockSpec(block, lambda i, s: (i,) + zeros)],
            out_specs=pl.BlockSpec(block, lambda i, s: (i,) + zeros),
        ),
        compiler_params=cparams,
        cost_estimate=cost,
    )(scale_arr, xv)
    return out.reshape(orig_shape)


if __name__ == "__main__":
    key = jax.random.PRNGKey(0)
    # FCOS head applies Scale per level to the regression map: NCHW, C=4 (l,t,r,b).
    x = jax.random.normal(key, (2, 4, 16, 16), dtype=jnp.float32)
    scale_param = jnp.asarray(0.731, dtype=jnp.float32)

    # f32 lane-dense path on the spec shape (force Pallas past the small-tensor bypass).
    out = jax.block_until_ready(scale_forward(x, scale_param, min_pallas_bytes=0))
    ref = x * scale_param
    assert out.shape == x.shape and out.dtype == x.dtype
    assert jnp.allclose(out, ref), "f32 mismatch vs reference"

    # Default init scale = 1.0 (identity), also through the kernel.
    out_id = jax.block_until_ready(
        scale_forward(x, jnp.asarray(1.0, jnp.float32), min_pallas_bytes=0)
    )
    assert jnp.allclose(out_id, x), "identity-scale mismatch"

    # bf16 path: the kernel keeps the tile in bf16 (scale cast to bf16 in-kernel).
    x_bf16 = x.astype(jnp.bfloat16)
    out_bf16 = jax.block_until_ready(scale_forward(x_bf16, scale_param, min_pallas_bytes=0))
    ref_bf16 = x_bf16 * scale_param.astype(jnp.bfloat16)
    assert out_bf16.shape == x_bf16.shape and out_bf16.dtype == jnp.bfloat16
    assert jnp.allclose(
        out_bf16.astype(jnp.float32), ref_bf16.astype(jnp.float32), rtol=2e-2, atol=2e-2
    ), "bf16 mismatch vs reference"

    # Larger lane-dense map: exercises byte-targeted TR with a multi-step grid.
    x_big = jax.random.normal(jax.random.PRNGKey(1), (2, 4, 128, 128), dtype=jnp.float32)
    out_big = jax.block_until_ready(scale_forward(x_big, scale_param, min_pallas_bytes=0))
    assert jnp.allclose(out_big, x_big * scale_param), "large-map mismatch"

    # Non-%128 shape: leading-dim-tiled fallback path.
    x_odd = jax.random.normal(jax.random.PRNGKey(2), (2, 4, 15, 15), dtype=jnp.float32)
    out_odd = jax.block_until_ready(scale_forward(x_odd, scale_param, min_pallas_bytes=0))
    assert jnp.allclose(out_odd, x_odd * scale_param), "fallback-path mismatch"

    # Default small-tensor bypass (XLA-fused path) matches too.
    out_bypass = jax.block_until_ready(scale_forward(x, scale_param))
    assert jnp.allclose(out_bypass, ref), "bypass mismatch"

    print("KERNEL_OK")
</pallas_src>

<mosaic_0001>
module attributes {stable_mosaic.version = 11 : i64} {
  func.func @_scale_kernel(%arg0: i32, %arg1: memref<1xf32, #tpu.memory_space<smem>>, %arg2: memref<4x512xf32, #tpu.memory_space<vmem>>, %arg3: memref<4x512xf32, #tpu.memory_space<vmem>>) attributes {dimension_semantics = [#tpu.dimension_semantics<parallel>], iteration_bounds = array<i64: 1>, scalar_prefetch = 1 : i64, scratch_operands = 0 : i64, tpu.core_type = #tpu.core_type<tc>, window_params = [{transform_indices = @transform_0, window_bounds = array<i64: 4, 512>}, {transform_indices = @transform_1, window_bounds = array<i64: 4, 512>}]} {
    %c0 = arith.constant 0 : index
    %c0_0 = arith.constant 0 : index
    %0 = vector.load %arg2[%c0, %c0_0] : memref<4x512xf32, #tpu.memory_space<vmem>>, vector<4x512xf32>
    %c0_1 = arith.constant 0 : index
    %1 = memref.load %arg1[%c0_1] : memref<1xf32, #tpu.memory_space<smem>>
    %2 = vector.broadcast %1 : f32 to vector<4x512xf32>
    %3 = arith.mulf %0, %2 : vector<4x512xf32>
    %c0_2 = arith.constant 0 : index
    %c0_3 = arith.constant 0 : index
    %4 = vector.load %arg3[%c0_2, %c0_3] : memref<4x512xf32, #tpu.memory_space<vmem>>, vector<4x512xf32>
    tpu.vector_store %arg3[%c0_2, %c0_3], %3 {strides = array<i32>} : memref<4x512xf32, #tpu.memory_space<vmem>>, vector<4x512xf32>,
    return
  }
  func.func @transform_0(%arg0: i32, %arg1: memref<1xf32, #tpu.memory_space<smem>>) -> (i32, i32) {
    %c0_i32 = arith.constant 0 : i32
    %c0_i32_0 = arith.constant 0 : i32
    return %arg0, %c0_i32 : i32, i32
  }
  func.func @transform_1(%arg0: i32, %arg1: memref<1xf32, #tpu.memory_space<smem>>) -> (i32, i32) {
    %c0_i32 = arith.constant 0 : i32
    %c0_i32_0 = arith.constant 0 : i32
    return %arg0, %c0_i32 : i32, i32
  }
}

</mosaic_0001>

<bundles_post_ra>
// kernel: tpu_custom_call.1
= control target key start
LH: loop header
LB: loop body
LE: loop exit
PB: predicated region body
PF: predicated region fallthrough
CT: control target
= control target key end

     0   :  { %8 = vsyncpa [#allocation5], 0  ;;  %s140_s0 = inlined_call_operand.<no memory space> [shape: f32[1], index: 0, kind: input, shape index: {}]   ;;  %s141_s1 = inlined_call_operand.hbm [shape: f32[4,512], index: 1, kind: input, shape index: {}]   ;;  %s142_s2 = inlined_call_operand.hbm [shape: f32[4,512], index: 2, kind: output, shape index: {}]  }
   0x1   :  { %9 = vsyncpa [#allocation6], 0  ;;  %s96_s9 = smov [#allocation4]   ;;  %s48_s13 = scalar_lea.hbm %s141_s1, 256 }
   0x2   :  { %s16_s10 = sshll.u32 %s96_s9, 4  ;;  %p49_p0 = scmp.ne.s32.totalorder %s141_s1, %s48_s13  ;;  %s17_s10 = int_to_ptr.vmem [resolvable:$true] %s16_s10 }
   0x3   :  { %p52_p1 = scmp.lt.u32.totalorder %s48_s13, %s141_s1 }
   0x5   :  { %p54_p2 = pnand %p52_p1, %p49_p0 }
   0x7   :  { %57 = shalt.err (!%p54_p2)
}
   0x8   :  { %s58_s18 = scalar_lea.vmem %s17_s10, 256  ;;  %p63_p4 = scmp.lt.s32.totalorder %s17_s10, %s17_s10 }
   0x9   :  { %p59_p3 = scmp.ne.s32.totalorder %s17_s10, %s58_s18  ;;  %p64_p5 = scmp.lt.s32.totalorder %s58_s18, %s58_s18 }
   0xb   :  { %p65_p6 = por %p64_p5, %p63_p4 }
   0xd   :  { %p66_p7 = pnand %p65_p6, %p59_p3 }
   0xf   :  { %69 = shalt.err (!%p66_p7)
}
  0x10   :  { %19 = dma.hbm_to_vmem [thread:$0]  %s141_s1, 256, %s17_s10, [#allocation5]  }
  0x11   :  { %92 = dma.done.wait [#allocation5], 256  }
  0x12   :  { %93 = vsyncadd [#allocation5], 4294967040  ;;  %v26_v0 = vstv %s140_s0  ;;  %s97_s23 = smov [#allocation7]   ;;  %v23_v1 = vld [vmem:[#allocation4] sm:$0xff]  ;;  %v24_v2 = vld [vmem:[#allocation4 + $0x8] sm:$0xff] }
  0x13   :  { %s37_s24 = sshll.u32 %s97_s23, 4  ;;  %v27_v3 = vmul.f32 %v26_v0, %v23_v1  ;;  %v28_v4 = vmul.f32 %v26_v0, %v24_v2  ;;  %s38_s24 = int_to_ptr.vmem [resolvable:$true] %s37_s24 }
  0x14   :  { %s70_s25 = scalar_lea.vmem %s38_s24, 256  ;;  %p75_p9 = scmp.lt.s32.totalorder %s38_s24, %s38_s24 }
  0x15   :  { %29 = vst [vmem:[#allocation7] sm:$0xff] %v27_v3  ;;  %30 = vst [vmem:[#allocation7 + $0x8] sm:$0xff] %v28_v4  ;;  %p71_p8 = scmp.ne.s32.totalorder %s38_s24, %s70_s25  ;;  %p76_p10 = scmp.lt.s32.totalorder %s70_s25, %s70_s25 }
  0x17   :  { %p77_p11 = por %p76_p10, %p75_p9 }
  0x19   :  { %p78_p12 = pnand %p77_p11, %p71_p8 }
  0x1b   :  { %81 = shalt.err (!%p78_p12)
}
  0x1c   :  { %s82_s0 = scalar_lea.hbm %s142_s2, 256 }
  0x1d   :  { %p83_p13 = scmp.ne.s32.totalorder %s142_s2, %s82_s0  ;;  %p86_p0 = scmp.lt.u32.totalorder %s82_s0, %s142_s2 }
  0x1f   :  { %p88_p1 = pnand %p86_p0, %p83_p13 }
  0x21   :  { %91 = shalt.err (!%p88_p1)
}
  0x22   :  { %40 = dma.vmem_to_hbm [thread:$0]  %s38_s24, 256, %s142_s2, [#allocation6]  }
  0x23   :  { %94 = dma.done.wait [#allocation6], 256  }
  0x24   :  { %95 = vsyncadd [#allocation6], 4294967040 }
  0x25   :  { %44 = vsyncpa [#allocation5], 1 }
  0x26   :  { %45 = vsyncpa [#allocation6], 1 }

</bundles_post_ra>
